<compile_context>
chip_gen: v5e
topology: v5e:2x2
jax: 0.10.0
libtpu: 0.0.40
codegen_flags: <defaults>
</compile_context>

<pallas_src>
import math

import jax
import jax.numpy as jnp
from jax.experimental import pallas as pl
from jax.experimental.pallas import tpu as pltpu

LEAKY_ALPHA = 0.2       # `alpha` arg of the module (LeakyReLU negative slope)
DROPOUT_P = 0.6         # `dropout` arg (identity here -- eval mode)
CONCAT = True
MASK_VAL = -9.0e15      # matches -9000000000000000.0 in the reference


def _gat_kernel(h_ref, adj_ref, w_ref, a_ref, out_ref, wh_sc, f1_sc, f2t_sc):
    # h_ref:   (1, M, Fin)        f32
    # adj_ref: (1, tm, M)         int8 (0 = no edge)
    # w_ref:   (Fin, Fpad)        f32 (zero-padded columns beyond Fout)
    # a_ref:   (Fpad, 2)          f32 (col 0 = a[:Fout], col 1 = a[Fout:])
    # out_ref: (1, tm, Fpad)      f32
    # wh_sc:   (M, Fpad)  f32 scratch, f1_sc: (M, 1), f2t_sc: (1, M)
    r = pl.program_id(1)
    tm = out_ref.shape[1]

    # Per-batch-element setup: runs only on the first row tile of each batch
    # element (row axis is "arbitrary", so it is never split across cores).
    @pl.when(r == 0)
    def _():
        Wh = jnp.dot(h_ref[0], w_ref[...],
                     preferred_element_type=jnp.float32)          # (M, Fpad)
        wh_sc[...] = Wh
        # One lane-denser (Fpad, 2) matmul replaces two N=1 matmuls.
        fa = jnp.dot(Wh, a_ref[...],
                     preferred_element_type=jnp.float32)          # (M, 2)
        f1_sc[...] = fa[:, 0:1]                                   # (M, 1)
        f2t_sc[...] = jnp.transpose(fa[:, 1:2], (1, 0))           # (1, M)

    row0 = pl.multiple_of(r * tm, tm)

    # e[i, j] = leakyrelu( Wh[i].a1 + Wh[j].a2 ), masked by adjacency.
    e = f1_sc[pl.ds(row0, tm), :] + f2t_sc[...]                   # (tm, M)
    e = jnp.where(e > 0.0, e, LEAKY_ALPHA * e)                    # LeakyReLU
    e = jnp.where(adj_ref[0] != 0, e, MASK_VAL)                   # scalar bcast

    # Numerically-stable softmax over the neighbor axis (matches F.softmax).
    e = e - jnp.max(e, axis=-1, keepdims=True)
    p = jnp.exp(e)
    attention = p * pl.reciprocal(jnp.sum(p, axis=-1, keepdims=True),
                                  approx=True)

    # TODO(synk): F.dropout on `attention` is applied as identity (eval mode);
    # training-mode dropout would use pltpu.prng_seed / stateful_bernoulli.

    h_prime = jnp.dot(attention, wh_sc[...],
                      preferred_element_type=jnp.float32)         # (tm, Fpad)

    if CONCAT:
        # ELU: clamp before exp so the discarded positive branch never hits inf.
        neg = jnp.exp(jnp.minimum(h_prime, 0.0)) - 1.0
        h_prime = jnp.where(h_prime > 0.0, h_prime, neg)
    out_ref[0] = h_prime.astype(out_ref.dtype)


def gat_layer(h, adj, W, a, *, row_tile=None):
    """h: (B, M, Fin); adj: (B, M, M); W: (Fin, Fout); a: (2*Fout, 1)."""
    B, M, Fin = h.shape
    Fout = W.shape[1]
    LANE = 128
    Fpad = ((Fout + LANE - 1) // LANE) * LANE    # lane-dense MXU N / output

    # Pad W / a so all matmul N dims and the output last dim are >= 128.
    W_pad = jnp.zeros((Fin, Fpad), jnp.float32).at[:, :Fout].set(
        W.astype(jnp.float32))
    a_comb = jnp.concatenate([a[:Fout, :], a[Fout:, :]], axis=1)  # (Fout, 2)
    a_pad = jnp.zeros((Fpad, 2), jnp.float32).at[:Fout, :].set(
        a_comb.astype(jnp.float32))

    # adj as int8: 4x less HBM traffic and VMEM than f32 (same `> 0` edges).
    adj_i8 = (adj > 0).astype(jnp.int8)

    # Query-row tile: bounds the (tm, M) adjacency block in VMEM.
    # Tiles kept >= 32 (int8 sublane tile); otherwise fall back to full M.
    if row_tile is None:
        row_tile = M
        if M > 256:
            for cand in (512, 256, 128, 64, 32):
                if M % cand == 0:
                    row_tile = cand
                    break
    num_row_tiles = M // row_tile

    # Scoped-VMEM estimate (double-buffered blocks + persistent scratch).
    est = (2 * M * Fin * 4            # h block
           + 2 * row_tile * M * 1     # adj block (int8)
           + 2 * Fin * Fpad * 4       # W
           + 2 * Fpad * 2 * 4         # a
           + 2 * row_tile * Fpad * 4  # out block
           + M * Fpad * 4             # Wh scratch
           + M * LANE * 4 + 8 * M * 4)  # f1 / f2t scratch (lane/sublane pad)
    vmem_limit = int(min(64 * 2 ** 20, max(32 * 2 ** 20, 2 * est)))

    out = pl.pallas_call(
        _gat_kernel,
        out_shape=jax.ShapeDtypeStruct((B, M, Fpad), jnp.float32),
        grid_spec=pltpu.PrefetchScalarGridSpec(
            num_scalar_prefetch=0,
            grid=(B, num_row_tiles),
            in_specs=[
                pl.BlockSpec((1, M, Fin), lambda b, r: (b, 0, 0)),
                pl.BlockSpec((1, row_tile, M), lambda b, r: (b, r, 0)),
                pl.BlockSpec((Fin, Fpad), lambda b, r: (0, 0)),
                pl.BlockSpec((Fpad, 2), lambda b, r: (0, 0)),
            ],
            out_specs=pl.BlockSpec((1, row_tile, Fpad), lambda b, r: (b, r, 0)),
            scratch_shapes=[
                pltpu.VMEM((M, Fpad), jnp.float32),   # Wh (per batch element)
                pltpu.VMEM((M, 1), jnp.float32),      # f1 = Wh @ a1
                pltpu.VMEM((1, M), jnp.float32),      # f2^T = (Wh @ a2)^T
            ],
        ),
        compiler_params=pltpu.CompilerParams(
            dimension_semantics=("parallel", "arbitrary"),
            vmem_limit_bytes=vmem_limit,
        ),
    )(h.astype(jnp.float32), adj_i8, W_pad, a_pad)
    return out[..., :Fout]


def _xavier_uniform(key, shape, gain):
    fan_in, fan_out = shape[0], shape[1]
    bound = gain * math.sqrt(6.0 / (fan_in + fan_out))
    return jax.random.uniform(key, shape, jnp.float32, minval=-bound, maxval=bound)


def _reference(h, adj, W, a):
    # Pure-JAX reference mirroring the PyTorch forward (eval mode).
    Fout = W.shape[1]
    Wh = jnp.einsum("bmf,fo->bmo", h, W)
    f1 = Wh @ a[:Fout, 0]                      # (B, M)
    f2 = Wh @ a[Fout:, 0]                      # (B, M)
    e = f1[:, :, None] + f2[:, None, :]        # (B, M, M)
    e = jnp.where(e > 0, e, LEAKY_ALPHA * e)
    e = jnp.where(adj > 0, e, MASK_VAL)
    att = jax.nn.softmax(e, axis=-1)
    hp = jnp.einsum("bij,bjo->bio", att, Wh)
    return jnp.where(hp > 0, hp, jnp.exp(jnp.minimum(hp, 0.0)) - 1.0) if CONCAT else hp


if __name__ == "__main__":
    B, M, Fin, Fout = 2, 8, 16, 32

    key = jax.random.PRNGKey(0)
    k_h, k_adj, k_w, k_a = jax.random.split(key, 4)

    h = jax.random.normal(k_h, (B, M, Fin), jnp.float32)
    # Random sparse adjacency with self-loops.
    adj = (jax.random.uniform(k_adj, (B, M, M)) > 0.5).astype(jnp.float32)
    adj = jnp.maximum(adj, jnp.eye(M, dtype=jnp.float32)[None, :, :])

    # Deterministic xavier_uniform_ init with gain=1.414 (as in __init__).
    W = _xavier_uniform(k_w, (Fin, Fout), gain=1.414)
    a = _xavier_uniform(k_a, (2 * Fout, 1), gain=1.414)

    out = gat_layer(h, adj, W, a)
    jax.block_until_ready(out)

    ref = _reference(h, adj, W, a)
    assert out.shape == (B, M, Fout)
    # Tolerance loosened slightly for the approximate (EUP) softmax reciprocal.
    err = float(jnp.max(jnp.abs(out - ref)))
    assert err < 2e-2, f"max abs err {err}"

    print("KERNEL_OK")
</pallas_src>

<mosaic_0001>
module attributes {stable_mosaic.version = 11 : i64} {
  func.func @_gat_kernel(%arg0: i32, %arg1: i32, %arg2: memref<1x8x16xf32, #tpu.memory_space<vmem>>, %arg3: memref<1x8x8xi8, #tpu.memory_space<vmem>>, %arg4: memref<16x128xf32, #tpu.memory_space<vmem>>, %arg5: memref<128x2xf32, #tpu.memory_space<vmem>>, %arg6: memref<1x8x128xf32, #tpu.memory_space<vmem>>, %arg7: memref<8x128xf32, #tpu.memory_space<vmem>>, %arg8: memref<8x1xf32, #tpu.memory_space<vmem>>, %arg9: memref<1x8xf32, #tpu.memory_space<vmem>>) attributes {dimension_semantics = [#tpu.dimension_semantics<parallel>, #tpu.dimension_semantics<arbitrary>], iteration_bounds = array<i64: 2, 1>, scalar_prefetch = 0 : i64, scratch_operands = 3 : i64, tpu.core_type = #tpu.core_type<tc>, window_params = [{transform_indices = @transform_0, window_bounds = array<i64: 1, 8, 16>}, {transform_indices = @transform_1, window_bounds = array<i64: 1, 8, 8>}, {pipeline_mode = #tpu.pipeline_mode<synchronous>, transform_indices = @transform_2, window_bounds = array<i64: 16, 128>}, {pipeline_mode = #tpu.pipeline_mode<synchronous>, transform_indices = @transform_3, window_bounds = array<i64: 128, 2>}, {transform_indices = @transform_4, window_bounds = array<i64: 1, 8, 128>}]} {
    %c0_i32 = arith.constant 0 : i32
    %0 = arith.cmpi eq, %arg1, %c0_i32 : i32
    %1 = arith.extui %0 : i1 to i32
    %c0_i32_0 = arith.constant 0 : i32
    %2 = arith.cmpi ne, %1, %c0_i32_0 : i32
    scf.if %2 {
      %c0_19 = arith.constant 0 : index
      %c0_20 = arith.constant 0 : index
      %c0_21 = arith.constant 0 : index
      %45 = vector.load %arg2[%c0_19, %c0_20, %c0_21] : memref<1x8x16xf32, #tpu.memory_space<vmem>>, vector<1x8x16xf32>
      %46 = vector.shape_cast %45 : vector<1x8x16xf32> to vector<8x16xf32>
      %c0_22 = arith.constant 0 : index
      %c0_23 = arith.constant 0 : index
      %47 = vector.load %arg4[%c0_22, %c0_23] : memref<16x128xf32, #tpu.memory_space<vmem>>, vector<16x128xf32>
      %cst_24 = arith.constant dense<0.000000e+00> : vector<8x128xf32>
      %48 = tpu.matmul %46, %47, %cst_24 {dimension_numbers = #tpu.dot_dimension_numbers<[1], [0], [0], [1], [0, 0, 1, 1], [], []>} : vector<8x16xf32>, vector<16x128xf32>, vector<8x128xf32> -> vector<8x128xf32>
      %c0_25 = arith.constant 0 : index
      %c0_26 = arith.constant 0 : index
      %49 = vector.load %arg7[%c0_25, %c0_26] : memref<8x128xf32, #tpu.memory_space<vmem>>, vector<8x128xf32>
      tpu.vector_store %arg7[%c0_25, %c0_26], %48 {strides = array<i32>} : memref<8x128xf32, #tpu.memory_space<vmem>>, vector<8x128xf32>,
      %c0_27 = arith.constant 0 : index
      %c0_28 = arith.constant 0 : index
      %50 = vector.load %arg5[%c0_27, %c0_28] : memref<128x2xf32, #tpu.memory_space<vmem>>, vector<128x2xf32>
      %cst_29 = arith.constant dense<0.000000e+00> : vector<8x2xf32>
      %51 = tpu.matmul %48, %50, %cst_29 {dimension_numbers = #tpu.dot_dimension_numbers<[1], [0], [0], [1], [0, 0, 1, 1], [], []>} : vector<8x128xf32>, vector<128x2xf32>, vector<8x2xf32> -> vector<8x2xf32>
      %52 = vector.extract_strided_slice %51 {offsets = [0, 0], sizes = [8, 1], strides = [1, 1]} : vector<8x2xf32> to vector<8x1xf32>
      %c0_30 = arith.constant 0 : index
      %c0_31 = arith.constant 0 : index
      %53 = vector.load %arg8[%c0_30, %c0_31] : memref<8x1xf32, #tpu.memory_space<vmem>>, vector<8x1xf32>
      tpu.vector_store %arg8[%c0_30, %c0_31], %52 {strides = array<i32>} : memref<8x1xf32, #tpu.memory_space<vmem>>, vector<8x1xf32>,
      %54 = vector.extract_strided_slice %51 {offsets = [0, 1], sizes = [8, 1], strides = [1, 1]} : vector<8x2xf32> to vector<8x1xf32>
      %55 = tpu.transpose %54, [1, 0] : vector<8x1xf32> -> vector<1x8xf32>
      %c0_32 = arith.constant 0 : index
      %c0_33 = arith.constant 0 : index
      %56 = vector.load %arg9[%c0_32, %c0_33] : memref<1x8xf32, #tpu.memory_space<vmem>>, vector<1x8xf32>
      tpu.vector_store %arg9[%c0_32, %c0_33], %55 {strides = array<i32>} : memref<1x8xf32, #tpu.memory_space<vmem>>, vector<1x8xf32>,
    } else {
    }
    %c8_i32 = arith.constant 8 : i32
    %3 = arith.muli %arg1, %c8_i32 : i32
    %4 = tpu.assume_multiple %3, 8 : i32
    %5 = arith.index_cast %4 : i32 to index
    %c0 = arith.constant 0 : index
    %6 = vector.load %arg8[%5, %c0] : memref<8x1xf32, #tpu.memory_space<vmem>>, vector<8x1xf32>
    %c0_1 = arith.constant 0 : index
    %c0_2 = arith.constant 0 : index
    %7 = vector.load %arg9[%c0_1, %c0_2] : memref<1x8xf32, #tpu.memory_space<vmem>>, vector<1x8xf32>
    %8 = vector.broadcast %6 : vector<8x1xf32> to vector<8x8xf32>
    %9 = vector.broadcast %7 : vector<1x8xf32> to vector<8x8xf32>
    %10 = arith.addf %8, %9 : vector<8x8xf32>
    %cst = arith.constant 0.000000e+00 : f32
    %11 = vector.broadcast %cst : f32 to vector<8x8xf32>
    %12 = arith.cmpf ogt, %10, %11 : vector<8x8xf32>
    %cst_3 = arith.constant 2.000000e-01 : f32
    %13 = vector.broadcast %cst_3 : f32 to vector<8x8xf32>
    %14 = arith.mulf %13, %10 : vector<8x8xf32>
    %15 = arith.select %12, %10, %14 : vector<8x8xi1>, vector<8x8xf32>
    %c0_4 = arith.constant 0 : index
    %c0_5 = arith.constant 0 : index
    %c0_6 = arith.constant 0 : index
    %16 = vector.load %arg3[%c0_4, %c0_5, %c0_6] : memref<1x8x8xi8, #tpu.memory_space<vmem>>, vector<1x8x8xi8>
    %17 = vector.shape_cast %16 : vector<1x8x8xi8> to vector<8x8xi8>
    %c0_i8 = arith.constant 0 : i8
    %18 = vector.broadcast %c0_i8 : i8 to vector<8x8xi8>
    %19 = arith.cmpi ne, %17, %18 : vector<8x8xi8>
    %cst_7 = arith.constant -9.000000e+15 : f32
    %20 = vector.broadcast %cst_7 : f32 to vector<8x8xf32>
    %21 = arith.select %19, %15, %20 : vector<8x8xi1>, vector<8x8xf32>
    %cst_8 = arith.constant dense<0xFF800000> : vector<8xf32>
    %22 = vector.multi_reduction <maximumf>, %21, %cst_8 [1] : vector<8x8xf32> to vector<8xf32>
    %23 = vector.shape_cast %22 : vector<8xf32> to vector<8x1xf32>
    %24 = vector.broadcast %23 : vector<8x1xf32> to vector<8x8xf32>
    %25 = arith.subf %21, %24 : vector<8x8xf32>
    %26 = math.exp %25 : vector<8x8xf32>
    %cst_9 = arith.constant dense<0.000000e+00> : vector<8xf32>
    %27 = vector.multi_reduction <add>, %26, %cst_9 [1] : vector<8x8xf32> to vector<8xf32>
    %28 = vector.shape_cast %27 : vector<8xf32> to vector<8x1xf32>
    %29 = tpu.reciprocal %28 {approx = true} : vector<8x1xf32> -> vector<8x1xf32>
    %30 = vector.broadcast %29 : vector<8x1xf32> to vector<8x8xf32>
    %31 = arith.mulf %26, %30 : vector<8x8xf32>
    %c0_10 = arith.constant 0 : index
    %c0_11 = arith.constant 0 : index
    %32 = vector.load %arg7[%c0_10, %c0_11] : memref<8x128xf32, #tpu.memory_space<vmem>>, vector<8x128xf32>
    %cst_12 = arith.constant dense<0.000000e+00> : vector<8x128xf32>
    %33 = tpu.matmul %31, %32, %cst_12 {dimension_numbers = #tpu.dot_dimension_numbers<[1], [0], [0], [1], [0, 0, 1, 1], [], []>} : vector<8x8xf32>, vector<8x128xf32>, vector<8x128xf32> -> vector<8x128xf32>
    %cst_13 = arith.constant 0.000000e+00 : f32
    %34 = vector.broadcast %cst_13 : f32 to vector<8x128xf32>
    %35 = arith.minimumf %33, %34 : vector<8x128xf32>
    %36 = math.exp %35 : vector<8x128xf32>
    %cst_14 = arith.constant 1.000000e+00 : f32
    %37 = vector.broadcast %cst_14 : f32 to vector<8x128xf32>
    %38 = arith.subf %36, %37 : vector<8x128xf32>
    %cst_15 = arith.constant 0.000000e+00 : f32
    %39 = vector.broadcast %cst_15 : f32 to vector<8x128xf32>
    %40 = arith.cmpf ogt, %33, %39 : vector<8x128xf32>
    %41 = arith.select %40, %33, %38 : vector<8x128xi1>, vector<8x128xf32>
    %c0_16 = arith.constant 0 : index
    %c0_17 = arith.constant 0 : index
    %c0_18 = arith.constant 0 : index
    %42 = vector.load %arg6[%c0_16, %c0_17, %c0_18] : memref<1x8x128xf32, #tpu.memory_space<vmem>>, vector<1x8x128xf32>
    %43 = vector.shape_cast %42 : vector<1x8x128xf32> to vector<8x128xf32>
    %44 = vector.shape_cast %41 : vector<8x128xf32> to vector<1x8x128xf32>
    tpu.vector_store %arg6[%c0_16, %c0_17, %c0_18], %44 {strides = array<i32>} : memref<1x8x128xf32, #tpu.memory_space<vmem>>, vector<1x8x128xf32>,
    return
  }
  func.func @transform_0(%arg0: i32, %arg1: i32) -> (i32, i32, i32) {
    %c0_i32 = arith.constant 0 : i32
    %c0_i32_0 = arith.constant 0 : i32
    %c0_i32_1 = arith.constant 0 : i32
    return %arg0, %c0_i32, %c0_i32_0 : i32, i32, i32
  }
  func.func @transform_1(%arg0: i32, %arg1: i32) -> (i32, i32, i32) {
    %c0_i32 = arith.constant 0 : i32
    %c0_i32_0 = arith.constant 0 : i32
    return %arg0, %arg1, %c0_i32 : i32, i32, i32
  }
  func.func @transform_2(%arg0: i32, %arg1: i32) -> (i32, i32) {
    %c0_i32 = arith.constant 0 : i32
    %c0_i32_0 = arith.constant 0 : i32
    %c0_i32_1 = arith.constant 0 : i32
    return %c0_i32, %c0_i32_0 : i32, i32
  }
  func.func @transform_3(%arg0: i32, %arg1: i32) -> (i32, i32) {
    %c0_i32 = arith.constant 0 : i32
    %c0_i32_0 = arith.constant 0 : i32
    %c0_i32_1 = arith.constant 0 : i32
    return %c0_i32, %c0_i32_0 : i32, i32
  }
  func.func @transform_4(%arg0: i32, %arg1: i32) -> (i32, i32, i32) {
    %c0_i32 = arith.constant 0 : i32
    %c0_i32_0 = arith.constant 0 : i32
    return %arg0, %arg1, %c0_i32 : i32, i32, i32
  }
}

</mosaic_0001>

<bundles_post_ra>
// kernel: tpu_custom_call.1
= control target key start
LH: loop header
LB: loop body
LE: loop exit
PB: predicated region body
PF: predicated region fallthrough
CT: control target
= control target key end

     0   :  { %9 = vsyncpa [#allocation6], 0  ;;  %s861_s0 = inlined_call_operand.vmem [shape: f32[2,8,16], index: 0, kind: input, shape index: {}]   ;;  %s862_s1 = inlined_call_operand.vmem [shape: s8[2,8,8], index: 1, kind: input, shape index: {}]   ;;  %s863_s2 = inlined_call_operand.vmem [shape: f32[16,128], index: 2, kind: input, shape index: {}]   ;;  %s864_s3 = inlined_call_operand.vmem [shape: f32[128,2], index: 3, kind: input, shape index: {}]   ;;  %s865_s4 = inlined_call_operand.hbm [shape: f32[2,8,128], index: 4, kind: output, shape index: {}]  }
   0x1   :  { %11 = vsyncpa [#allocation6 + $0x1], 0  ;;  %s700_s15 = smov 0   ;;  %s702_s16 = smov 0  }
   0x2   :  { %s704_s17 = smov 0   ;;  %s706_s18 = smov 0  }
   0x3   :  { %s708_s19 = smov 0   ;;  %s710_s20 = smov 0  }
   0x4 LB: > { %s512_s21 = sadd.s32 4294967295, %s671_s20   ;;  %s513_s22 = sadd.s32 4294967294, %s671_s20   ;;  %s671_s20 = sphi %s710_s20, %s17_s20   ;;  %s667_s19 = sphi %s708_s19, %s872_s19   ;;  %s663_s18 = sphi %s706_s18, %s871_s18   ;;  %s659_s17 = sphi %s704_s17, %s870_s17   ;;  %s655_s16 = sphi %s702_s16, %s869_s16   ;;  %s651_s15 = sphi %s700_s15, %s868_s15  }
   0x5   : > { %s29_s23 = sadd.s32 1, %s667_s19  ;;  %s134_s24 = sadd.s32 1, %s659_s17 }
   0x6   : > { %p31_p0 = scmp.ge.s32.totalorder %s29_s23, 2  ;;  %p144_p1 = scmp.ne.s32.totalorder %s659_s17, %s655_s16 }
   0x7   : > { %p145_p2 = scmp.eq.s32.totalorder %s512_s21, 1  ;;  %p150_p3 = scmp.ne.s32.totalorder %s655_s16, %s651_s15 }
   0x8   : > { %s874_s23 = smov (%p31_p0, %s29_s23), 0  ;;  %p151_p5 = scmp.eq.s32.totalorder %s513_s22, 1 }
   0x9   : > { %p740_p4 = por %p145_p2, %p144_p1  ;;  %s129_s26 = ssub.s32 %s667_s19, %s874_s23 }
   0xa   : > { %p516_p6 = scmp.ge.s32.totalorder %s671_s20, 1  ;;  %p132_p7 = scmp.eq.s32.totalorder %s129_s26, 0 }
   0xb   : > { %p747_p8 = por %p151_p5, %p150_p3  ;;  %p192_p9 = scmp.lt.s32.totalorder %s671_s20, 3 }
   0xc   : > { %s753_s28 = scalar_select %p132_p7, %s659_s17, %s134_s24  }
   0xd   : > { %p193_p10 = pnand %p516_p6, %p192_p9 }
   0xe   : > { %p224_p11 = scmp.lt.s32.totalorder (!%p193_p10), %s663_s18, 1  ;;  %s524_s30 = sshll.u32 (!%p193_p10), %s663_s18, 3 }
   0xf   : > { %196 = sbr.rel (%p193_p10) target bundleno = 974 (0x3ce), region = 36  ;;  %s422_s7 = scalar_lea.hbm (!%p193_p10), %s865_s4, %s524_s30 }
  0x10   : > { %s426_s10 = sshll.u32 (!%p193_p10), %s422_s7, 4  ;;  %s613_s22 = scalar_lea.hbm (!%p193_p10), %s865_s4, 16  ;;  %s427_s10 = int_to_ptr.hbm [resolvable:$true] %s426_s10 }
  0x11   : > { %s607_s13 = sshra.s32 (!%p193_p10), %s427_s10, 4  ;;  %s608_s13 = int_to_ptr.hbm [resolvable:$true] %s607_s13 }
  0x12   : > { %p614_p1 = scmp.lt.s32.totalorder (!%p193_p10), %s608_s13, %s865_s4 }
  0x14   : > { %v243_v0 = vld [vmem:[%s863_s2 + $0x8] sm:$0xff]  ;;  %v242_v1 = vld [vmem:[%s863_s2] sm:$0xff]  ;;  %v284_v2 = vld [vmem:[%s864_s3 + $0x78] sm:$0xff]  ;;  %s769_s11 = scalar_select %p224_p11, %s663_s18, 1  ;;  %vm244_vm0 = vcmask 130048   ;;  %v673_v20 = vmov 0  }
  0x15   : > { %262 = vmatpush.msra.mxu0 %v243_v0  ;;  %285 = vmatpush.msra.mxu1 %v284_v2  ;;  %v283_v3 = vld [vmem:[%s864_s3 + $0x70] sm:$0xff]  ;;  %v282_v4 = vld [vmem:[%s864_s3 + $0x68] sm:$0xff]  ;;  %v281_v5 = vld [vmem:[%s864_s3 + $0x60] sm:$0xff]  ;;  %vm305_vm1 = vcmask 7168   ;;  %vm343_vm2 = vcmask 57344   ;;  %vm367_vm6 = vcmask 64512  }
  0x16   : > { %s518_s14 = sshll.u32 %s769_s11, 3  ;;  %v280_v7 = vld [vmem:[%s864_s3 + $0x58] sm:$0xff]  ;;  %v279_v8 = vld [vmem:[%s864_s3 + $0x50] sm:$0xff]  ;;  %v278_v9 = vld [vmem:[%s864_s3 + $0x48] sm:$0xff]  ;;  %585 = vset.pattern.permute.xlu0 %v673_v20  ;;  %s519_s21 = sshll.u32 %s769_s11, 1 }
  0x17   : > { %263 = vmatpush.msra.mxu0 %v242_v1  ;;  %286 = vmatpush.msra.mxu1 %v283_v3  ;;  %s227_s29 = scalar_lea.vmem %s861_s0, %s518_s14  ;;  %v277_v10 = vld [vmem:[%s864_s3 + $0x40] sm:$0xff]  ;;  %v276_v11 = vld [vmem:[%s864_s3 + $0x38] sm:$0xff]  ;;  %v275_v12 = vld [vmem:[%s864_s3 + $0x30] sm:$0xff]  ;;  %s674_s14 = smov 127  }
  0x18   : > { %v241_v6 = vld [vmem:[%s227_s29] sm:$0xff]  ;;  %v274_v13 = vld [vmem:[%s864_s3 + $0x28] sm:$0xff]  ;;  %v272_v15 = vld [vmem:[%s864_s3 + $0x18] sm:$0xff]  ;;  %s234_s26 = scalar_lea.vmem %s862_s1, %s519_s21  ;;  %s221_s11 = sand.u32 1, %s655_s16  }
  0x19   : > { %287 = vmatpush.msra.mxu1 %v282_v4  ;;  %520 = vmatmul.msk.f32.vlgmr.msra.gmra.mxu0 %vm244_vm0, %v241_v6  ;;  %v273_v14 = vld [vmem:[%s864_s3 + $0x20] sm:$0xff]  ;;  %v271_v16 = vld [vmem:[%s864_s3 + $0x10] sm:$0xff]  ;;  %v270_v17 = vld [vmem:[%s864_s3 + $0x8] sm:$0xff]  ;;  %s517_s29 = sshll.u32 %s221_s11, 3  ;;  %s411_s12 = scalar_lea.sflag [#allocation6], %s221_s11 }
  0x1a   : > { %v269_v18 = vld [vmem:[%s864_s3] sm:$0xff]  ;;  %s223_s8 = scalar_lea.vmem [#allocation5], %s517_s29  ;;  %s609_s18 = scalar_lea.hbm %s608_s13, 8 }
  0x1b   : > { %288 = vmatpush.msra.mxu1 %v281_v5  ;;  %v361_v24 = vld [vmem:[%s234_s26] sm:$0x3]  ;;  %s424_s9 = sshll.u32 %s223_s8, 4  ;;  %p610_p12 = scmp.ne.s32.totalorder %s608_s13, %s609_s18  ;;  %s425_s9 = int_to_ptr.vmem [resolvable:$true] %s424_s9 }
  0x1c   : > { %vm362_vm3 = vnez %v361_v24  ;;  %p615_p2 = scmp.lt.s32.totalorder %s613_s22, %s609_s18 }
  0x1d   : > { %289 = vmatpush.msra.mxu1 %v280_v7  ;;  %v363_v26 = vsel %vm362_vm3, 16843009, %v673_v20  ;;  %p611_p13 = pnand %p610_p12, %p740_p4 }
  0x1e   : > { %v364_v27 = vunpack.c.0.s8 %v363_v26  ;;  %p616_p3 = por %p615_p2, %p614_p1 }
  0x1f   : > { %290 = vmatpush.msra.mxu1 %v279_v8  ;;  %p612_p0 = pneg %p611_p13 }
  0x20   : > { %vm365_vm4 = vcmp.ne.s32.totalorder %v364_v27, 0 }
  0x21   : > { %291 = vmatpush.msra.mxu1 %v278_v9  ;;  %p617_p5 = pnand %p616_p3, %p612_p0 }
  0x23   : > { %292 = vmatpush.msra.mxu1 %v277_v10 }
  0x25   : > { %293 = vmatpush.msra.mxu1 %v276_v11 }
  0x27   : > { %294 = vmatpush.msra.mxu1 %v275_v12 }
  0x29   : > { %295 = vmatpush.msra.mxu1 %v274_v13 }
  0x2b   : > { %296 = vmatpush.msra.mxu1 %v273_v14 }
  0x2d   : > { %297 = vmatpush.msra.mxu1 %v272_v15 }
  0x2f   : > { %298 = vmatpush.msra.mxu1 %v271_v16 }
  0x31   : > { %299 = vmatpush.msra.mxu1 %v270_v17 }
  0x33   : > { %300 = vmatpush.msra.mxu1 %v269_v18 }
  0x96   : > { %v265_v19 = vpop.f32.mrf.mxu0 }
  0x97   : > { %301 = vmatmul.f32.vlgmr.msra.gmra.mxu1 %v265_v19  ;;  %398 = vmatpush.msra.mxu2 %v265_v19 }
 0x114   : > { %v302_v21 = vpop.f32.mrf.mxu1 }
 0x115   : > { %306 = vst.msk [vmem:[#allocation3] sm:$0xff] %vm305_vm1, %v302_v21  ;;  %308 = vrot.lane.b32.xlu0 %v302_v21, %s674_s14 }
 0x11c   : > { %v347_v22 = vld [vmem:[#allocation3] sm:$0xff] }
 0x11d   : > { %351 = vperm.xlu0 %585, %v347_v22  }
 0x187   : > { %v309_v23 = vpop.permute.xlu0 %308 }
 0x188   : > { %311 = vxpose.xlu1.b32.start.end [1/1] (short) (narrow) %v309_v23, 8 }
 0x18f   : > { %v352_v29 = vpop.permute.xlu0 %351 }
 0x22c   : > { %v327_v25 = vpop.trf.xlu1 }
 0x22d   : > { %344 = vst.msk [vmem:[#allocation4] sm:$0x1] %vm343_vm2, %v327_v25 }
 0x234   : > { %v586_v28 = vld [vmem:[#allocation4] ss:$0 sm:$0xff] }
 0x235   : > { %v357_v30 = vadd.f32 %v586_v28, %v352_v29 }
 0x237   : > { %vm358_vm5 = vcmp.gt.f32.partialorder %v357_v30, 0.0  ;;  %v359_v31 = vmul.f32 0.2, %v357_v30 }
 0x239   : > { %v360_v32 = vsel %vm358_vm5, %v357_v30, %v359_v31 }
 0x23a   : > { %v366_v33 = vsel %vm365_vm4, %v360_v32, -9e+15 }
 0x23b   : > { %v368_v34 = vsel %vm367_vm6, %v366_v33, -inf }
 0x23c   : > { %369 = vmax.xlane.f32.xlu1 %v368_v34 }
 0x2af   : > { %v370_v35 = vpop.xlane.xlu1 %369 }
 0x2b0   : > { %v371_v36 = vsub.f32 %v366_v33, %v370_v35 }
 0x2b2   : > { %v372_v37 = vmul.f32 1.442695, %v371_v36 }
 0x2b4   : > { %587 = vpow2.f32 %v372_v37 }
 0x2ba   : > { %v588_v38 = vpop.eup %587 }
 0x2bb   : > { %v374_v39 = vsel %vm367_vm6, %v588_v38, 0.0 }
 0x2bc   : > { %375 = vadd.xlane.f32.xlu2 %v374_v39 }
 0x32f   : > { %v376_v40 = vpop.xlane.xlu2 %375 }
 0x330   : > { %589 = vrcp.f32 %v376_v40 }
 0x336   : > { %v590_v41 = vpop.eup %589 }
 0x337   : > { %v378_v42 = vmul.f32 %v590_v41, %v588_v38 }
 0x339   : > { %521 = vmatmul.msk.f32.vlgmr.msra.gmra.mxu2 %vm367_vm6, %v378_v42 }
 0x3bc   : > { %v400_v43 = vpop.f32.mrf.mxu2 }
 0x3bd   : > { %v403_v44 = vmin.f32 %v400_v43, 0.0  ;;  %vm407_vm7 = vcmp.gt.f32.partialorder %v400_v43, 0.0 }
 0x3bf   : > { %v404_v45 = vmul.f32 1.442695, %v403_v44 }
 0x3c1   : > { %591 = vpow2.f32 %v404_v45 }
 0x3c7   : > { %v592_v46 = vpop.eup %591 }
 0x3c8   : > { %v522_v47 = vadd.f32 -1.0, %v592_v46 }
 0x3ca   : > { %v408_v48 = vsel %vm407_vm7, %v400_v43, %v522_v47 }
 0x3cb   : > { %409 = vst [vmem:[%s223_s8] sm:$0xff] %v408_v48 }
 0x3cc   : > { %620 = shalt.err (!%p617_p5)
}
 0x3cd   : > { %527 = dma.vmem_to_hbm [thread:$0]  (%p740_p4), %s425_s9, 128, %s427_s10, %s411_s12  }
 0x3ce PF: > { %p533_p6 = scmp.ge.s32.totalorder %s671_s20, 2  ;;  %s438_s11 = sand.u32 1, %s651_s15  }
 0x3cf   : > { %s439_s29 = scalar_lea.sflag [#allocation6], %s438_s11 }
 0x3d0   : > { %p530_p7 = pnand %p533_p6, %p747_p8 }
 0x3d2   : > { %p531_p9 = pneg %p530_p7 }
 0x3d4   : > { %646 = dma.done.wait (%p531_p9), %s439_s29, 128  }
 0x3d5   : > { %648 = vsyncadd (%p531_p9), %s439_s29, 4294967168  ;;  %s17_s20 = sadd.s32 1, %s671_s20   ;;  %s868_s15 = smov %s655_s16 }
 0x3d6   : > { %p14_p10 = scmp.ge.s32.totalorder %s17_s20, 4   ;;  %s869_s16 = smov %s659_s17 }
 0x3d7   : > { %s870_s17 = smov %s753_s28  ;;  %s871_s18 = smov %s667_s19 }
 0x3d8   : > { %s872_s19 = smov %s874_s23  ;;  %16 = sbr.rel (!%p14_p10) target bundleno = 4 (0x4), region = 79 }
 0x3dd   :  { %445 = vsyncpa [#allocation6], 1 }
 0x3de   :  { %447 = vsyncpa [#allocation6 + $0x1], 1 }

</bundles_post_ra>
